<compile_context>
chip_gen: v7x
topology: tpu7x:2x2x1
jax: 0.10.0
libtpu: 0.0.40
codegen_flags: <defaults>
</compile_context>

<pallas_src>
import functools

import jax
import jax.numpy as jnp
from jax import lax
from jax.experimental import pallas as pl
from jax.experimental.pallas import tpu as pltpu

O_HEADS = 13   # 1 (A) + 1 (V) + 1 (D) + 10 (C)
O_PAD = 128    # lane-dense output / weight width


def _round_up(n, m):
    return -(-n // m) * m


def _emotion_head_kernel(x_ref, w_ref, b_ref, o_ref, acc_ref, *,
                         seq_len, tile_t, tiles_per_part, needs_mask, inv_t):
    # x_ref:   (TB, TT, D)     SSL-feature tile (f32 or bf16; accumulated in f32)
    # w_ref:   (D, O_PAD)      concatenated head weights (unscaled)
    # b_ref:   (1, O_PAD)      concatenated head biases
    # o_ref:   (1, TB, O_PAD)  per-part partial head outputs
    # acc_ref: (TB, D) f32     running sum over the T (reduction) grid axis
    p = pl.program_id(1)
    t = pl.program_id(2)

    @pl.when(t == 0)
    def _():
        acc_ref[...] = jnp.zeros_like(acc_ref)

    x = x_ref[...].astype(jnp.float32)                       # (TB, TT, D)
    if needs_mask:
        # Mask the ragged T tail (and any clamped duplicate tile) in-kernel
        # instead of padding x in HBM.
        g = p * tiles_per_part + t                           # global T-tile idx
        remaining = seq_len - g * tile_t                     # may be <= 0
        tmask = lax.broadcasted_iota(jnp.int32, x.shape[1:], 0) < remaining
        x = jnp.where(tmask, x, 0.0)
    acc_ref[...] += jnp.sum(x, axis=1)                       # plain f32 sum

    @pl.when(t == pl.num_programs(2) - 1)
    def _():
        # mean = acc * (1/T), then one (TB, D) @ (D, 128) MXU matmul.
        out = jnp.dot(acc_ref[...] * inv_t, w_ref[...],
                      preferred_element_type=jnp.float32)     # (TB, O_PAD)
        add_bias = (p == 0).astype(jnp.float32)               # bias added once
        o_ref[0] = out + b_ref[...] * add_bias


def emotion_predictor_forward(x, w_cat, b_cat, *, tb=8, tt=None, n_parts=None):
    """x: (B, T, D) SSL features (f32 or bf16); returns (A, V, D, C)."""
    B, T, D = x.shape
    assert w_cat.shape == (D, O_HEADS)
    itemsize = jnp.dtype(x.dtype).itemsize
    sub = 16 if itemsize < 4 else 8          # sublane packing (bf16 vs f32)

    # --- tile sizes ---------------------------------------------------------
    TB = tb                                  # keep small: epilogue MXU irrelevant
    if tt is None:
        # Double-buffered x tiles must leave VMEM headroom on v7x (64 MiB).
        tt = max(sub, ((36 << 20) // (2 * TB * D * itemsize)) // sub * sub)
        tt = min(tt, 1024 if itemsize < 4 else 512)
    TT = max(sub, min(_round_up(tt, sub), _round_up(T, sub)))

    b_tiles = pl.cdiv(B, TB)
    nT = pl.cdiv(T, TT)
    if n_parts is None:
        # Feed both v7x TensorCores when there is only one batch tile.
        n_parts = 2 if (b_tiles == 1 and nT >= 2) else 1
    tiles_per_part = pl.cdiv(nT, n_parts)

    tail = (T % TT) != 0
    overshoot = (n_parts * tiles_per_part) != nT
    needs_mask = tail or overshoot

    # --- params (unscaled; 1/T applied at finalize inside the kernel) --------
    w_p = jnp.zeros((D, O_PAD), jnp.float32).at[:, :O_HEADS].set(
        w_cat.astype(jnp.float32))
    b_p = jnp.zeros((1, O_PAD), jnp.float32).at[:, :O_HEADS].set(
        b_cat.astype(jnp.float32).reshape(1, O_HEADS))

    grid = (b_tiles, n_parts, tiles_per_part)     # T reduction axis last

    def x_map(b, p, t):
        g = p * tiles_per_part + t
        return (b, jnp.minimum(g, nT - 1), 0)     # clamp; duplicates are masked

    kernel = functools.partial(
        _emotion_head_kernel, seq_len=T, tile_t=TT,
        tiles_per_part=tiles_per_part, needs_mask=needs_mask,
        inv_t=1.0 / float(T))

    bytes_accessed = (B * T * D * itemsize + D * O_PAD * 4 + O_PAD * 4
                      + n_parts * B * O_PAD * 4)
    flops = 2 * B * T * D + 2 * n_parts * B * D * O_PAD

    partials = pl.pallas_call(
        kernel,
        out_shape=jax.ShapeDtypeStruct((n_parts, B, O_PAD), jnp.float32),
        grid=grid,
        in_specs=[
            pl.BlockSpec((TB, TT, D), x_map),
            pl.BlockSpec((D, O_PAD), lambda b, p, t: (0, 0)),
            pl.BlockSpec((1, O_PAD), lambda b, p, t: (0, 0)),
        ],
        out_specs=pl.BlockSpec((1, TB, O_PAD), lambda b, p, t: (p, b, 0)),
        scratch_shapes=[pltpu.VMEM((TB, D), jnp.float32)],
        compiler_params=pltpu.CompilerParams(
            dimension_semantics=("parallel", "parallel", "arbitrary"),
            vmem_limit_bytes=48 << 20),
        cost_estimate=pl.CostEstimate(
            flops=flops, transcendentals=0, bytes_accessed=bytes_accessed),
    )(x, w_p, b_p)

    out = jnp.sum(partials, axis=0)[:, :O_HEADS]   # tiny combine of the parts
    output_A = out[:, 0]        # squeeze(1)
    output_V = out[:, 1]
    output_D = out[:, 2]
    output_C = out[:, 3:13]     # (B, 10)
    return output_A, output_V, output_D, output_C


def init_params(key, ssl_out_dim):
    """Deterministic init mimicking nn.Linear (uniform +-1/sqrt(fan_in))."""
    bound = 1.0 / jnp.sqrt(jnp.float32(ssl_out_dim))
    keys = jax.random.split(key, 8)
    w_A = jax.random.uniform(keys[0], (ssl_out_dim, 1), jnp.float32, -bound, bound)
    b_A = jax.random.uniform(keys[1], (1,), jnp.float32, -bound, bound)
    w_V = jax.random.uniform(keys[2], (ssl_out_dim, 1), jnp.float32, -bound, bound)
    b_V = jax.random.uniform(keys[3], (1,), jnp.float32, -bound, bound)
    w_D = jax.random.uniform(keys[4], (ssl_out_dim, 1), jnp.float32, -bound, bound)
    b_D = jax.random.uniform(keys[5], (1,), jnp.float32, -bound, bound)
    w_C = jax.random.uniform(keys[6], (ssl_out_dim, 10), jnp.float32, -bound, bound)
    b_C = jax.random.uniform(keys[7], (10,), jnp.float32, -bound, bound)
    w_cat = jnp.concatenate([w_A, w_V, w_D, w_C], axis=1)           # (D, 13)
    b_cat = jnp.concatenate([b_A, b_V, b_D, b_C], axis=0)[None, :]  # (1, 13)
    return w_cat, b_cat


def reference_forward(x, w_cat, b_cat):
    pooled = jnp.mean(x.astype(jnp.float32), axis=1)
    out = pooled @ w_cat + b_cat
    return out[:, 0], out[:, 1], out[:, 2], out[:, 3:13]


def _check(x, w_cat, b_cat, **kw):
    out_A, out_V, out_D, out_C = emotion_predictor_forward(x, w_cat, b_cat, **kw)
    jax.block_until_ready((out_A, out_V, out_D, out_C))
    ref_A, ref_V, ref_D, ref_C = reference_forward(x, w_cat, b_cat)
    B = x.shape[0]
    assert out_A.shape == (B,) and out_V.shape == (B,) and out_D.shape == (B,)
    assert out_C.shape == (B, 10)
    assert jnp.allclose(out_A, ref_A, atol=1e-5, rtol=1e-5)
    assert jnp.allclose(out_V, ref_V, atol=1e-5, rtol=1e-5)
    assert jnp.allclose(out_D, ref_D, atol=1e-5, rtol=1e-5)
    assert jnp.allclose(out_C, ref_C, atol=1e-5, rtol=1e-5)


if __name__ == "__main__":
    key = jax.random.PRNGKey(0)
    k_x, k_p, k_x2, k_x3, k_x4 = jax.random.split(key, 5)

    # Small shapes: batch=2, seq(time)=8, ssl_out_dim(hidden)=32
    B, T, D = 2, 8, 32
    w_cat, b_cat = init_params(k_p, D)

    # 1) basic f32 path (single tile, no masking)
    x = jax.random.normal(k_x, (B, T, D), dtype=jnp.float32)
    _check(x, w_cat, b_cat)

    # 2) ragged B/T with NO wrapper padding -> in-kernel T mask, masked OOB stores
    x2 = jax.random.normal(k_x2, (3, 11, D), dtype=jnp.float32)
    _check(x2, w_cat, b_cat)

    # 3) split-T partial-accumulator path (two "parallel" parts for v7x 2 TCs)
    x3 = jax.random.normal(k_x3, (2, 40, D), dtype=jnp.float32)
    _check(x3, w_cat, b_cat, tt=16)

    # 4) bf16 streaming input (half the HBM bytes; f32 accumulate in-kernel)
    x4 = jax.random.normal(k_x4, (2, 32, D), dtype=jnp.float32).astype(jnp.bfloat16)
    _check(x4, w_cat, b_cat)

    print("KERNEL_OK")
</pallas_src>

<mosaic_0001>
module attributes {stable_mosaic.version = 11 : i64} {
  func.func @_emotion_head_kernel(%arg0: i32, %arg1: i32, %arg2: i32, %arg3: memref<8x8x32xf32, #tpu.memory_space<vmem>>, %arg4: memref<32x128xf32, #tpu.memory_space<vmem>>, %arg5: memref<1x128xf32, #tpu.memory_space<vmem>>, %arg6: memref<1x8x128xf32, #tpu.memory_space<vmem>>, %arg7: memref<8x32xf32, #tpu.memory_space<vmem>>) attributes {dimension_semantics = [#tpu.dimension_semantics<parallel>, #tpu.dimension_semantics<parallel>, #tpu.dimension_semantics<arbitrary>], iteration_bounds = array<i64: 1, 1, 1>, scalar_prefetch = 0 : i64, scratch_operands = 1 : i64, tpu.core_type = #tpu.core_type<tc>, window_params = [{transform_indices = @transform_0, window_bounds = array<i64: 8, 8, 32>}, {pipeline_mode = #tpu.pipeline_mode<synchronous>, transform_indices = @transform_1, window_bounds = array<i64: 32, 128>}, {pipeline_mode = #tpu.pipeline_mode<synchronous>, transform_indices = @transform_2, window_bounds = array<i64: 1, 128>}, {transform_indices = @transform_3, window_bounds = array<i64: 1, 8, 128>}]} {
    %c0_i32 = arith.constant 0 : i32
    %0 = arith.cmpi eq, %arg2, %c0_i32 : i32
    %1 = arith.extui %0 : i1 to i32
    %c0_i32_0 = arith.constant 0 : i32
    %2 = arith.cmpi ne, %1, %c0_i32_0 : i32
    scf.if %2 {
      %cst_9 = arith.constant 0.000000e+00 : f32
      %11 = vector.broadcast %cst_9 : f32 to vector<8x32xf32>
      %c0_10 = arith.constant 0 : index
      %c0_11 = arith.constant 0 : index
      %12 = vector.load %arg7[%c0_10, %c0_11] : memref<8x32xf32, #tpu.memory_space<vmem>>, vector<8x32xf32>
      tpu.vector_store %arg7[%c0_10, %c0_11], %11 {strides = array<i32>} : memref<8x32xf32, #tpu.memory_space<vmem>>, vector<8x32xf32>,
    } else {
    }
    %c0 = arith.constant 0 : index
    %c0_1 = arith.constant 0 : index
    %c0_2 = arith.constant 0 : index
    %3 = vector.load %arg3[%c0, %c0_1, %c0_2] : memref<8x8x32xf32, #tpu.memory_space<vmem>>, vector<8x8x32xf32>
    %c0_3 = arith.constant 0 : index
    %c0_4 = arith.constant 0 : index
    %4 = vector.load %arg7[%c0_3, %c0_4] : memref<8x32xf32, #tpu.memory_space<vmem>>, vector<8x32xf32>
    %cst = arith.constant dense<0.000000e+00> : vector<8x32xf32>
    %5 = vector.multi_reduction <add>, %3, %cst [1] : vector<8x8x32xf32> to vector<8x32xf32>
    %6 = arith.addf %4, %5 : vector<8x32xf32>
    %c0_5 = arith.constant 0 : index
    %c0_6 = arith.constant 0 : index
    %7 = vector.load %arg7[%c0_5, %c0_6] : memref<8x32xf32, #tpu.memory_space<vmem>>, vector<8x32xf32>
    tpu.vector_store %arg7[%c0_5, %c0_6], %6 {strides = array<i32>} : memref<8x32xf32, #tpu.memory_space<vmem>>, vector<8x32xf32>,
    %c0_i32_7 = arith.constant 0 : i32
    %8 = arith.cmpi eq, %arg2, %c0_i32_7 : i32
    %9 = arith.extui %8 : i1 to i32
    %c0_i32_8 = arith.constant 0 : i32
    %10 = arith.cmpi ne, %9, %c0_i32_8 : i32
    scf.if %10 {
      %c0_9 = arith.constant 0 : index
      %c0_10 = arith.constant 0 : index
      %11 = vector.load %arg7[%c0_9, %c0_10] : memref<8x32xf32, #tpu.memory_space<vmem>>, vector<8x32xf32>
      %cst_11 = arith.constant 1.250000e-01 : f32
      %12 = vector.broadcast %cst_11 : f32 to vector<8x32xf32>
      %13 = arith.mulf %11, %12 : vector<8x32xf32>
      %c0_12 = arith.constant 0 : index
      %c0_13 = arith.constant 0 : index
      %14 = vector.load %arg4[%c0_12, %c0_13] : memref<32x128xf32, #tpu.memory_space<vmem>>, vector<32x128xf32>
      %cst_14 = arith.constant dense<0.000000e+00> : vector<8x128xf32>
      %15 = tpu.matmul %13, %14, %cst_14 {dimension_numbers = #tpu.dot_dimension_numbers<[1], [0], [0], [1], [0, 0, 1, 1], [], []>} : vector<8x32xf32>, vector<32x128xf32>, vector<8x128xf32> -> vector<8x128xf32>
      %c0_i32_15 = arith.constant 0 : i32
      %16 = arith.cmpi eq, %arg1, %c0_i32_15 : i32
      %17 = arith.extui %16 : i1 to i32
      %18 = arith.sitofp %17 : i32 to f32
      %c0_16 = arith.constant 0 : index
      %c0_17 = arith.constant 0 : index
      %19 = vector.load %arg5[%c0_16, %c0_17] : memref<1x128xf32, #tpu.memory_space<vmem>>, vector<1x128xf32>
      %20 = vector.broadcast %18 : f32 to vector<1x128xf32>
      %21 = arith.mulf %19, %20 : vector<1x128xf32>
      %22 = vector.broadcast %21 : vector<1x128xf32> to vector<8x128xf32>
      %23 = arith.addf %15, %22 : vector<8x128xf32>
      %c0_18 = arith.constant 0 : index
      %c0_19 = arith.constant 0 : index
      %c0_20 = arith.constant 0 : index
      %24 = vector.load %arg6[%c0_18, %c0_19, %c0_20] : memref<1x8x128xf32, #tpu.memory_space<vmem>>, vector<1x8x128xf32>
      %25 = vector.shape_cast %24 : vector<1x8x128xf32> to vector<8x128xf32>
      %26 = vector.shape_cast %23 : vector<8x128xf32> to vector<1x8x128xf32>
      tpu.vector_store %arg6[%c0_18, %c0_19, %c0_20], %26 {strides = array<i32>} : memref<1x8x128xf32, #tpu.memory_space<vmem>>, vector<1x8x128xf32>,
    } else {
    }
    return
  }
  func.func @transform_0(%arg0: i32, %arg1: i32, %arg2: i32) -> (i32, i32, i32) {
    %c1_i32 = arith.constant 1 : i32
    %0 = arith.muli %arg1, %c1_i32 : i32
    %1 = arith.addi %0, %arg2 : i32
    %c0_i32 = arith.constant 0 : i32
    %2 = arith.minsi %1, %c0_i32 : i32
    %c0_i32_0 = arith.constant 0 : i32
    %c0_i32_1 = arith.constant 0 : i32
    return %arg0, %2, %c0_i32_0 : i32, i32, i32
  }
  func.func @transform_1(%arg0: i32, %arg1: i32, %arg2: i32) -> (i32, i32) {
    %c0_i32 = arith.constant 0 : i32
    %c0_i32_0 = arith.constant 0 : i32
    %c0_i32_1 = arith.constant 0 : i32
    return %c0_i32, %c0_i32_0 : i32, i32
  }
  func.func @transform_2(%arg0: i32, %arg1: i32, %arg2: i32) -> (i32, i32) {
    %c0_i32 = arith.constant 0 : i32
    %c0_i32_0 = arith.constant 0 : i32
    %c0_i32_1 = arith.constant 0 : i32
    return %c0_i32, %c0_i32_0 : i32, i32
  }
  func.func @transform_3(%arg0: i32, %arg1: i32, %arg2: i32) -> (i32, i32, i32) {
    %c0_i32 = arith.constant 0 : i32
    %c0_i32_0 = arith.constant 0 : i32
    return %arg1, %arg0, %c0_i32 : i32, i32, i32
  }
}

</mosaic_0001>

<bundles_post_ra>
// kernel: tpu_custom_call.1
= control target key start
LH: loop header
LB: loop body
LE: loop exit
PB: predicated region body
PF: predicated region fallthrough
CT: control target
= control target key end

     0   :  { %8 = vsyncpa [#allocation4], 0  ;;  %s453_s0 = inlined_call_operand.hbm [shape: f32[2,8,32], index: 0, kind: input, shape index: {}]   ;;  %s454_s1 = inlined_call_operand.hbm [shape: f32[32,128], index: 1, kind: input, shape index: {}]   ;;  %s455_s2 = inlined_call_operand.vmem [shape: f32[1,128], index: 2, kind: input, shape index: {}]   ;;  %s456_s3 = inlined_call_operand.hbm [shape: f32[1,2,128], index: 3, kind: output, shape index: {}]  }
   0x1   :  { %9 = vsyncpa [#allocation7], 0 }
   0x2   :  { %10 = vsyncpa [#allocation5], 0 }
   0x3   :  { %18 = vsyncadd [#allocation4], 768  ;;  %s369_s12 = smov [#allocation3]   ;;  %s297_s16 = scalar_lea.hbm %s453_s0, 256 }
   0x4   :  { %s21_s13 = sshll.u32 %s369_s12, 4  ;;  %p298_p0 = scmp.ne.s32.totalorder %s453_s0, %s297_s16  ;;  %s22_s13 = int_to_ptr.vmem [resolvable:$true] %s21_s13 }
   0x5   :  { %p301_p1 = scmp.lt.u32.totalorder %s297_s16, %s453_s0 }
   0x7   :  { %p303_p2 = pnand %p301_p1, %p298_p0 }
   0x9   :  { %306 = shalt.err (!%p303_p2)
}
   0xa   :  { %s307_s21 = scalar_lea.vmem %s22_s13, 256  ;;  %s311_s22 = scalar_lea.vmem %s22_s13, 1024 }
   0xb   :  { %p308_p3 = scmp.ne.s32.totalorder %s22_s13, %s307_s21  ;;  %p312_p4 = scmp.lt.s32.totalorder %s22_s13, %s22_s13 }
   0xc   :  { %p313_p5 = scmp.lt.s32.totalorder %s311_s22, %s307_s21 }
   0xe   :  { %p314_p6 = por %p313_p5, %p312_p4 }
  0x10   :  { %p315_p7 = pnand %p314_p6, %p308_p3 }
  0x12   :  { %318 = shalt.err (!%p315_p7)
}
  0x13   :  { %s370_s23 = smov 128   ;;  %s371_s24 = smov 8  }
  0x14   :  { %27 = dma.hbm_to_vmem [thread:$0]  %s453_s0, 256, %s22_s13, [#allocation4], %s370_s23, %s370_s23, %s371_s24  }
  0x15   :  { %s372_s27 = smov [#allocation6]   ;;  %s319_s4 = scalar_lea.hbm %s454_s1, 512 }
  0x16   :  { %s33_s28 = sshll.u32 %s372_s27, 4  ;;  %p320_p8 = scmp.ne.s32.totalorder %s454_s1, %s319_s4  ;;  %s34_s28 = int_to_ptr.vmem [resolvable:$true] %s33_s28 }
  0x17   :  { %p323_p9 = scmp.lt.u32.totalorder %s319_s4, %s454_s1 }
  0x19   :  { %p325_p10 = pnand %p323_p9, %p320_p8 }
  0x1b   :  { %328 = shalt.err (!%p325_p10)
}
  0x1c   :  { %s329_s9 = scalar_lea.vmem %s34_s28, 512  ;;  %p334_p12 = scmp.lt.s32.totalorder %s34_s28, %s34_s28 }
  0x1d   :  { %p330_p11 = scmp.ne.s32.totalorder %s34_s28, %s329_s9  ;;  %p335_p13 = scmp.lt.s32.totalorder %s329_s9, %s329_s9 }
  0x1f   :  { %p336_p0 = por %p335_p13, %p334_p12 }
  0x21   :  { %p337_p1 = pnand %p336_p0, %p330_p11 }
  0x23   :  { %340 = shalt.err (!%p337_p1)
}
  0x24   :  { %39 = dma.hbm_to_vmem [thread:$0]  %s454_s1, 512, %s34_s28, [#allocation7], %s370_s23, %s370_s23, %s371_s24  }
  0x25   :  { %363 = dma.done.wait [#allocation4], 1024  }
  0x26   :  { %364 = vsyncadd [#allocation4], 4294966272 }
  0x27   :  { %365 = dma.done.wait [#allocation7], 512  }
  0x28   :  { %366 = vsyncadd [#allocation7], 4294966784  ;;  %vm55_vm0 = vcmask 261120   ;;  %v373_v0 = vmov 0.0|0.0   ;;  %v374_v1 = vmov 0.0   ;;  %vm375_vm1 = vmmov 0  }
  0x29   :  { %281 = vmatprep.subr.bf16.mxu0 %v373_v0  ;;  %56 = vst.msk [vmem:[#allocation2] sm:$0xff] %vm55_vm0, %v374_v1  ;;  %278 = vmatprep.mubr.msk.f32.mxu0 %vm375_vm1, %v374_v1  ;;  %v153_v2 = vld [vmem:[#allocation6] sm:$0xff]  ;;  %v154_v3 = vld [vmem:[#allocation6 + $0x8] sm:$0xff]  ;;  %v155_v4 = vld [vmem:[#allocation6 + $0x10] sm:$0xff]  ;;  %vm131_vm2 = vcmask 1041409   ;;  %vm133_vm3 = vcmask 1042434  }
  0x2a   :  { %v282_v5 = vpack.c.bf16 %v154_v3, %v153_v2  ;;  %v156_v6 = vld [vmem:[#allocation6 + $0x18] sm:$0xff]  ;;  %v57_v7 = vld [vmem:[#allocation3] sm:$0xff]  ;;  %v58_v8 = vld [vmem:[#allocation3 + $0x8] sm:$0xff]  ;;  %vm135_vm4 = vcmask 1043459   ;;  %vm137_vm5 = vcmask 1044484   ;;  %vm139_vm6 = vcmask 1045509  }
  0x2b   :  { %v59_v9 = vld [vmem:[#allocation3 + $0x10] sm:$0xff]  ;;  %v60_v10 = vld [vmem:[#allocation3 + $0x18] sm:$0xff]  ;;  %v61_v11 = vld [vmem:[#allocation3 + $0x20] sm:$0xff]  ;;  %v67_v12 = vsel %vm55_vm0, %v57_v7, 0.0  ;;  %v74_v13 = vsel %vm55_vm0, %v58_v8, 0.0  ;;  %v285_v14 = vpack.c.bf16 %v156_v6, %v155_v4  ;;  %vm141_vm7 = vcmask 1046534  }
  0x2c   :  { %283 = vmatpush3.bf16.msra.mxu0 %v282_v5  ;;  %v62_v15 = vld [vmem:[#allocation3 + $0x28] sm:$0xff]  ;;  %v63_v16 = vld [vmem:[#allocation3 + $0x30] sm:$0xff]  ;;  %v64_v17 = vld [vmem:[#allocation3 + $0x38] sm:$0xff]  ;;  %v68_v18 = vrot.slane %v67_v12, 4  ;;  %v75_v19 = vrot.slane %v74_v13, 4  ;;  %v81_v20 = vsel %vm55_vm0, %v59_v9, 0.0 }
  0x2d   :  { %284 = vmatprep.subr.bf16.mxu0 %v373_v0  ;;  %v82_v21 = vrot.slane %v81_v20, 4  ;;  %v88_v22 = vsel %vm55_vm0, %v60_v10, 0.0  ;;  %v95_v23 = vsel %vm55_vm0, %v61_v11, 0.0  ;;  %v102_v24 = vsel %vm55_vm0, %v62_v15, 0.0 }
  0x2e   :  { %v69_v25 = vadd.f32 %v68_v18, %v67_v12  ;;  %v76_v26 = vadd.f32 %v75_v19, %v74_v13  ;;  %v89_v27 = vrot.slane %v88_v22, 4  ;;  %v96_v28 = vrot.slane %v95_v23, 4  ;;  %v263_v19 = vld [vmem:[%s455_s2] ss:$0 sm:$0xff] }
  0x2f   :  { %v83_v29 = vadd.f32 %v82_v21, %v81_v20  ;;  %v103_v30 = vrot.slane %v102_v24, 4  ;;  %v109_v31 = vsel %vm55_vm0, %v63_v16, 0.0  ;;  %v116_v32 = vsel %vm55_vm0, %v64_v17, 0.0 }
  0x30   :  { %286 = vmatpush3.bf16.msra.mxu0 %v285_v14  ;;  %v70_v33 = vrot.slane %v69_v25, 2  ;;  %v77_v34 = vrot.slane %v76_v26, 2  ;;  %v90_v35 = vadd.f32 %v89_v27, %v88_v22  ;;  %v97_v36 = vadd.f32 %v96_v28, %v95_v23  ;;  %v65_v12 = vld [vmem:[#allocation2] sm:$0xff] }
  0x31   :  { %v84_v37 = vrot.slane %v83_v29, 2  ;;  %v104_v38 = vadd.f32 %v103_v30, %v102_v24  ;;  %v110_v39 = vrot.slane %v109_v31, 4  ;;  %v117_v40 = vrot.slane %v116_v32, 4 }
  0x32   :  { %v71_v41 = vadd.f32 %v70_v33, %v69_v25  ;;  %v78_v42 = vadd.f32 %v77_v34, %v76_v26  ;;  %v91_v43 = vrot.slane %v90_v35, 2  ;;  %v98_v44 = vrot.slane %v97_v36, 2 }
  0x33   :  { %v85_v45 = vadd.f32 %v84_v37, %v83_v29  ;;  %v105_v46 = vrot.slane %v104_v38, 2  ;;  %v111_v47 = vadd.f32 %v110_v39, %v109_v31  ;;  %v118_v48 = vadd.f32 %v117_v40, %v116_v32 }
  0x34   :  { %v72_v49 = vrot.slane %v71_v41, 1  ;;  %v79_v50 = vrot.slane %v78_v42, 1  ;;  %v92_v51 = vadd.f32 %v91_v43, %v90_v35  ;;  %v99_v52 = vadd.f32 %v98_v44, %v97_v36 }
  0x35   :  { %v86_v53 = vrot.slane %v85_v45, 1  ;;  %v106_v54 = vadd.f32 %v105_v46, %v104_v38  ;;  %v112_v55 = vrot.slane %v111_v47, 2  ;;  %v119_v56 = vrot.slane %v118_v48, 2 }
  0x36   :  { %v73_v57 = vadd.f32 %v72_v49, %v71_v41  ;;  %v80_v58 = vadd.f32 %v79_v50, %v78_v42  ;;  %v93_v59 = vrot.slane %v92_v51, 1  ;;  %v100_v60 = vrot.slane %v99_v52, 1 }
  0x37   :  { %v87_v61 = vadd.f32 %v86_v53, %v85_v45  ;;  %v107_v62 = vrot.slane %v106_v54, 1  ;;  %v113_v63 = vadd.f32 %v112_v55, %v111_v47  ;;  %v120_v0 = vadd.f32 %v119_v56, %v118_v48 }
  0x38   :  { %v94_v1 = vadd.f32 %v93_v59, %v92_v51  ;;  %v101_v2 = vadd.f32 %v100_v60, %v99_v52  ;;  %v132_v3 = vsel %vm131_vm2, %v80_v58, %v73_v57  ;;  %vm143_vm8 = vcmask 1047559  }
  0x39   :  { %v108_v4 = vadd.f32 %v107_v62, %v106_v54  ;;  %v114_v5 = vrot.slane %v113_v63, 1  ;;  %v121_v6 = vrot.slane %v120_v0, 1  ;;  %v134_v7 = vsel %vm133_vm3, %v87_v61, %v132_v3 }
  0x3a   :  { %v136_v8 = vsel %vm135_vm4, %v94_v1, %v134_v7 }
  0x3b   :  { %v115_v9 = vadd.f32 %v114_v5, %v113_v63  ;;  %v122_v10 = vadd.f32 %v121_v6, %v120_v0  ;;  %v138_v11 = vsel %vm137_vm5, %v101_v2, %v136_v8 }
  0x3c   :  { %v140_v13 = vsel %vm139_vm6, %v108_v4, %v138_v11 }
  0x3d   :  { %v142_v14 = vsel %vm141_vm7, %v115_v9, %v140_v13 }
  0x3e   :  { %v144_v15 = vsel %vm143_vm8, %v122_v10, %v142_v14 }
  0x3f   :  { %v146_v16 = vadd.f32 %v144_v15, %v65_v12 }
  0x41   :  { %147 = vst.msk [vmem:[#allocation2] sm:$0xff] %vm55_vm0, %v146_v16 }
  0x48   :  { %v151_v17 = vld [vmem:[#allocation2] sm:$0xff] }
  0x49   :  { %v152_v18 = vmul.f32 0.125, %v151_v17 }
  0x4b   :  { %279 = vmatmul.mubr.msk.f32.vlgmr.msra.gmra.mrb[0].mxu0 %vm55_vm0, %v152_v18 }
 0x11e   :  { %v238_v20 = vpop.f32.mrb[0].mxu0 }
 0x11f   :  { %v239_v21 = vadd.f32 %v263_v19, %v238_v20  ;;  %v280_v22 = vpop.f32.mrb[1].mxu0 }
 0x121   :  { %242 = vst [vmem:[#allocation8] sm:$0xff] %v239_v21 }
 0x122   :  { %247 = vsyncadd [#allocation5], 96  ;;  %s376_s12 = smov [#allocation8]  }
 0x123   :  { %s248_s13 = sshll.u32 %s376_s12, 4  ;;  %s249_s13 = int_to_ptr.vmem [resolvable:$true] %s248_s13 }
 0x124   :  { %s341_s14 = scalar_lea.vmem %s249_s13, 32  ;;  %s345_s15 = scalar_lea.vmem %s249_s13, 128 }
 0x125   :  { %p342_p2 = scmp.ne.s32.totalorder %s249_s13, %s341_s14  ;;  %p346_p3 = scmp.lt.s32.totalorder %s249_s13, %s249_s13 }
 0x126   :  { %p347_p4 = scmp.lt.s32.totalorder %s345_s15, %s341_s14 }
 0x128   :  { %p348_p5 = por %p347_p4, %p346_p3 }
 0x12a   :  { %p349_p6 = pnand %p348_p5, %p342_p2 }
 0x12c   :  { %352 = shalt.err (!%p349_p6)
}
 0x12d   :  { %s353_s2 = scalar_lea.hbm %s456_s3, 32 }
 0x12e   :  { %p354_p7 = scmp.ne.s32.totalorder %s456_s3, %s353_s2  ;;  %p357_p8 = scmp.lt.u32.totalorder %s353_s2, %s456_s3 }
 0x130   :  { %p359_p9 = pnand %p357_p8, %p354_p7 }
 0x132   :  { %362 = shalt.err (!%p359_p9)
}
 0x133   :  { %s377_s22 = smov 32   ;;  %s378_s23 = smov 2  }
 0x134   :  { %254 = dma.vmem_to_hbm [thread:$0]  %s249_s13, 32, %s456_s3, [#allocation5], %s377_s22, %s377_s22, %s378_s23  }
 0x135   :  { %367 = dma.done.wait [#allocation5], 128  }
 0x136   :  { %368 = vsyncadd [#allocation5], 4294967168 }
 0x137   :  { %258 = vsyncpa [#allocation4], 1 }
 0x138   :  { %259 = vsyncpa [#allocation7], 1 }
 0x139   :  { %260 = vsyncpa [#allocation5], 1 }

</bundles_post_ra>
